<compile_context>
chip_gen: v7x
topology: tpu7x:2x2x1
jax: 0.10.0
libtpu: 0.0.40
codegen_flags: <defaults>
</compile_context>

<pallas_src>
import functools

import jax
import jax.numpy as jnp
from jax.experimental import pallas as pl
from jax.experimental.pallas import tpu as pltpu


def _round_up(x, m):
    return ((x + m - 1) // m) * m


def _cdiv(a, b):
    return -(-a // b)


def fc1l_kernel(m_ref, w_ref, b_ref, out_ref, *, num_meaning_types,
                meanings_per_type):
    """One tile: one-hot encode [tile_n, T*M], matmul against a weight slab.

    m_ref:   [tile_n, T]       int32   (index-encoded meanings)
    w_ref:   [T*M,    tile_f]  float32
    b_ref:   [1,      tile_f]  float32
    out_ref: [tile_n, tile_f]  float32
    """
    t_dim = num_meaning_types
    mpt = meanings_per_type
    tm = t_dim * mpt

    m = m_ref[...]                                   # [tile_n, T] int32
    nb = m.shape[0]

    # Lane-dense one-hot: a single [tile_n, T*M] iota compared against the
    # flattened target index (m[n,t] + t*M) of each meaning type.  T is a small
    # static hyperparameter, so this unrolls into T full-vreg VPU compares --
    # no 3-D iota, no reshape/relayout.
    iota = jax.lax.broadcasted_iota(jnp.int32, (nb, tm), 1)
    hit = iota == m[:, 0:1]                          # type t = 0
    for t in range(1, t_dim):
        hit = jnp.logical_or(hit, iota == (m[:, t:t + 1] + t * mpt))

    # Single cast, straight to the MXU operand dtype (f32 weights -> exact
    # nn.Linear semantics for the 0/1 LHS).
    onehot = hit.astype(w_ref.dtype)
    acc = jnp.dot(onehot, w_ref[...], preferred_element_type=jnp.float32)

    # Bias add in f32 (broadcast over sublanes).
    out_ref[...] = acc + b_ref[...]


def _choose_tile_f(out_features):
    """Largest F block: whole out_features unless it can be split on 128s."""
    if out_features % 128 == 0 and out_features > 2048:
        for cand in range(2048, 0, -128):
            if out_features % cand == 0:
                return cand
    return out_features


def _vmem_bytes(tile_n, tile_f, t, in_features):
    """Rough double-buffered VMEM footprint of one grid step (4-byte elements)."""
    def tile_bytes(r, c):
        return _round_up(r, 8) * _round_up(c, 128) * 4
    per_step = (tile_bytes(tile_n, tile_f)            # output
                + tile_bytes(in_features, tile_f)     # weight
                + tile_bytes(tile_n, t)               # meanings (int32)
                + tile_bytes(1, tile_f))              # bias
    return 2 * per_step                               # double-buffered


def prepare_params(weight, bias):
    """One-time parameter prep (hoisted out of the per-call forward path)."""
    return weight.astype(jnp.float32), bias.astype(jnp.float32).reshape(1, -1)


def fc1l_forward(meanings, weight, bias2d, *, utt_len, vocab_size,
                 meanings_per_type):
    """Full FC1LModel.forward. Returns [utt_len, N, vocab_size + 1] float32.

    weight is [in_features, out_features] (transposed vs. PyTorch's [out, in]);
    bias2d is [1, out_features] (from prepare_params).
    """
    n, t = meanings.shape
    in_features = t * meanings_per_type
    out_features = utt_len * (vocab_size + 1)
    assert weight.shape == (in_features, out_features)
    assert bias2d.shape == (1, out_features)

    # --- tile-size selection -------------------------------------------------
    tile_f = _choose_tile_f(out_features)

    tile_n = min(_round_up(n, 8), 1024)
    # v7x has 2 TensorCores: make sure there are >= 2 parallel N tiles when
    # there is enough work to split.
    if _cdiv(n, tile_n) == 1 and n >= 16:
        tile_n = _round_up(_cdiv(n, 2), 8)
    # Keep the double-buffered working set well inside v7x's 64 MiB VMEM.
    while tile_n > 8 and _vmem_bytes(tile_n, tile_f, t,
                                     in_features) > 24 * 1024 * 1024:
        tile_n = max(8, _round_up(tile_n // 2, 8))

    n_blocks = _cdiv(n, tile_n)
    f_blocks = out_features // tile_f
    # F is the slow (outer) grid axis so the weight/bias blocks stay resident
    # across the inner N loop.
    grid = (f_blocks, n_blocks)

    kernel = functools.partial(
        fc1l_kernel, num_meaning_types=t, meanings_per_type=meanings_per_type)

    cost = pl.CostEstimate(
        flops=2 * n * in_features * out_features,
        transcendentals=0,
        bytes_accessed=(4 * n * out_features              # output writes
                        + 4 * in_features * out_features  # weight reads
                        + 4 * n * t                       # meanings reads
                        + 4 * out_features))              # bias reads

    out_flat = pl.pallas_call(
        kernel,
        out_shape=jax.ShapeDtypeStruct((n, out_features), jnp.float32),
        grid=grid,
        in_specs=[
            pl.BlockSpec((tile_n, t), lambda j, i: (i, 0)),
            pl.BlockSpec((in_features, tile_f), lambda j, i: (0, j)),
            pl.BlockSpec((1, tile_f), lambda j, i: (0, j)),
        ],
        out_specs=pl.BlockSpec((tile_n, tile_f), lambda j, i: (i, j)),
        compiler_params=pltpu.CompilerParams(
            # Independent F/N tiles: both axes parallel (uses both TCs on v7x).
            dimension_semantics=("parallel", "parallel"),
            # Explicit scoped-VMEM budget: above v5e's 16 MiB default, below
            # v7x's 64 MiB physical VMEM.
            vmem_limit_bytes=32 * 1024 * 1024,
        ),
        cost_estimate=cost,
    )(meanings.astype(jnp.int32), weight, bias2d)

    # Glue kept in XLA (V+1 << 128 lanes): reshape + transpose fuse into one
    # copy; no slice needed because the kernel output is exactly [N, F].
    utts = out_flat.reshape(n, utt_len, vocab_size + 1)
    return jnp.transpose(utts, (1, 0, 2))


def _reference_forward(meanings, weight, bias, *, utt_len, vocab_size,
                       meanings_per_type):
    """Exact-f32 reference (gather + 4-term sum, no matmul precision ambiguity)."""
    n, t_dim = meanings.shape
    flat_idx = meanings + jnp.arange(t_dim, dtype=meanings.dtype)[None, :] * meanings_per_type
    gathered = weight[flat_idx]                      # [N, T, out_features]
    utts = gathered.sum(axis=1) + bias               # [N, out_features]
    utts = utts.reshape(n, utt_len, vocab_size + 1)
    return jnp.transpose(utts, (1, 0, 2))


if __name__ == "__main__":
    # Small, self-consistent hyperparameters (matching the PyTorch module).
    embedding_size = 32          # unused by forward (as in the PyTorch module)
    num_meaning_types = 4        # T
    meanings_per_type = 8        # M
    utt_len = 6
    vocab_size = 9               # output token dim = vocab_size + 1 = 10
    N = 8

    in_features = num_meaning_types * meanings_per_type          # 32
    out_features = utt_len * (vocab_size + 1)                    # 60

    key = jax.random.PRNGKey(0)
    k_meanings, k_w, k_b = jax.random.split(key, 3)

    # Index-encoded meanings: [N, T] in [0, meanings_per_type).
    meanings = jax.random.randint(
        k_meanings, (N, num_meaning_types), 0, meanings_per_type,
        dtype=jnp.int32)

    # Deterministic Linear params (PyTorch-style uniform(-1/sqrt(fan_in), .)).
    bound = 1.0 / jnp.sqrt(jnp.float32(in_features))
    # Stored as [in_features, out_features] (transposed vs PyTorch [out, in]).
    weight = jax.random.uniform(
        k_w, (in_features, out_features), jnp.float32, -bound, bound)
    bias = jax.random.uniform(
        k_b, (out_features,), jnp.float32, -bound, bound)

    # One-time parameter prep (hoisted out of the forward path).
    w_prep, b_prep = prepare_params(weight, bias)

    fwd = jax.jit(functools.partial(
        fc1l_forward, utt_len=utt_len, vocab_size=vocab_size,
        meanings_per_type=meanings_per_type))

    out = jax.block_until_ready(fwd(meanings, w_prep, b_prep))

    ref = _reference_forward(meanings, weight, bias,
                             utt_len=utt_len, vocab_size=vocab_size,
                             meanings_per_type=meanings_per_type)

    assert out.shape == (utt_len, N, vocab_size + 1), out.shape
    assert out.dtype == jnp.float32
    # Tolerance covers a possible reduced-precision f32 MXU path; with full-f32
    # matmul the difference is ~1 ulp.
    assert jnp.allclose(out, ref, atol=2e-3, rtol=1e-3), "mismatch vs reference"

    print("KERNEL_OK")
</pallas_src>

<mosaic_0001>
module attributes {stable_mosaic.version = 11 : i64} {
  func.func @fc1l_kernel(%arg0: i32, %arg1: i32, %arg2: memref<8x4xi32, #tpu.memory_space<vmem>>, %arg3: memref<32x60xf32, #tpu.memory_space<vmem>>, %arg4: memref<1x60xf32, #tpu.memory_space<vmem>>, %arg5: memref<8x60xf32, #tpu.memory_space<vmem>>) attributes {dimension_semantics = [#tpu.dimension_semantics<parallel>, #tpu.dimension_semantics<parallel>], iteration_bounds = array<i64: 1, 1>, scalar_prefetch = 0 : i64, scratch_operands = 0 : i64, tpu.core_type = #tpu.core_type<tc>, window_params = [{transform_indices = @transform_0, window_bounds = array<i64: 8, 4>}, {transform_indices = @transform_1, window_bounds = array<i64: 32, 60>}, {transform_indices = @transform_2, window_bounds = array<i64: 1, 60>}, {transform_indices = @transform_3, window_bounds = array<i64: 8, 60>}]} {
    %c0 = arith.constant 0 : index
    %c0_0 = arith.constant 0 : index
    %0 = vector.load %arg2[%c0, %c0_0] : memref<8x4xi32, #tpu.memory_space<vmem>>, vector<8x4xi32>
    %1 = tpu.iota {dimensions = array<i32: 1>} : vector<8x32xi32>
    %2 = vector.extract_strided_slice %0 {offsets = [0, 0], sizes = [8, 1], strides = [1, 1]} : vector<8x4xi32> to vector<8x1xi32>
    %3 = vector.broadcast %2 : vector<8x1xi32> to vector<8x32xi32>
    %4 = arith.cmpi eq, %1, %3 : vector<8x32xi32>
    %5 = vector.extract_strided_slice %0 {offsets = [0, 1], sizes = [8, 1], strides = [1, 1]} : vector<8x4xi32> to vector<8x1xi32>
    %c8_i32 = arith.constant 8 : i32
    %6 = vector.broadcast %c8_i32 : i32 to vector<8x1xi32>
    %7 = arith.addi %5, %6 : vector<8x1xi32>
    %8 = vector.broadcast %7 : vector<8x1xi32> to vector<8x32xi32>
    %9 = arith.cmpi eq, %1, %8 : vector<8x32xi32>
    %10 = arith.ori %4, %9 : vector<8x32xi1>
    %11 = vector.extract_strided_slice %0 {offsets = [0, 2], sizes = [8, 1], strides = [1, 1]} : vector<8x4xi32> to vector<8x1xi32>
    %c16_i32 = arith.constant 16 : i32
    %12 = vector.broadcast %c16_i32 : i32 to vector<8x1xi32>
    %13 = arith.addi %11, %12 : vector<8x1xi32>
    %14 = vector.broadcast %13 : vector<8x1xi32> to vector<8x32xi32>
    %15 = arith.cmpi eq, %1, %14 : vector<8x32xi32>
    %16 = arith.ori %10, %15 : vector<8x32xi1>
    %17 = vector.extract_strided_slice %0 {offsets = [0, 3], sizes = [8, 1], strides = [1, 1]} : vector<8x4xi32> to vector<8x1xi32>
    %c24_i32 = arith.constant 24 : i32
    %18 = vector.broadcast %c24_i32 : i32 to vector<8x1xi32>
    %19 = arith.addi %17, %18 : vector<8x1xi32>
    %20 = vector.broadcast %19 : vector<8x1xi32> to vector<8x32xi32>
    %21 = arith.cmpi eq, %1, %20 : vector<8x32xi32>
    %22 = arith.ori %16, %21 : vector<8x32xi1>
    %23 = arith.extui %22 : vector<8x32xi1> to vector<8x32xi32>
    %24 = arith.sitofp %23 : vector<8x32xi32> to vector<8x32xf32>
    %c0_1 = arith.constant 0 : index
    %c0_2 = arith.constant 0 : index
    %25 = vector.load %arg3[%c0_1, %c0_2] : memref<32x60xf32, #tpu.memory_space<vmem>>, vector<32x60xf32>
    %cst = arith.constant dense<0.000000e+00> : vector<8x60xf32>
    %26 = tpu.matmul %24, %25, %cst {dimension_numbers = #tpu.dot_dimension_numbers<[1], [0], [0], [1], [0, 0, 1, 1], [], []>} : vector<8x32xf32>, vector<32x60xf32>, vector<8x60xf32> -> vector<8x60xf32>
    %c0_3 = arith.constant 0 : index
    %c0_4 = arith.constant 0 : index
    %27 = vector.load %arg4[%c0_3, %c0_4] : memref<1x60xf32, #tpu.memory_space<vmem>>, vector<1x60xf32>
    %28 = vector.broadcast %27 : vector<1x60xf32> to vector<8x60xf32>
    %29 = arith.addf %26, %28 : vector<8x60xf32>
    %c0_5 = arith.constant 0 : index
    %c0_6 = arith.constant 0 : index
    %30 = vector.load %arg5[%c0_5, %c0_6] : memref<8x60xf32, #tpu.memory_space<vmem>>, vector<8x60xf32>
    tpu.vector_store %arg5[%c0_5, %c0_6], %29 {strides = array<i32>} : memref<8x60xf32, #tpu.memory_space<vmem>>, vector<8x60xf32>,
    return
  }
  func.func @transform_0(%arg0: i32, %arg1: i32) -> (i32, i32) {
    %c0_i32 = arith.constant 0 : i32
    %c0_i32_0 = arith.constant 0 : i32
    return %arg1, %c0_i32 : i32, i32
  }
  func.func @transform_1(%arg0: i32, %arg1: i32) -> (i32, i32) {
    %c0_i32 = arith.constant 0 : i32
    %c0_i32_0 = arith.constant 0 : i32
    return %c0_i32, %arg0 : i32, i32
  }
  func.func @transform_2(%arg0: i32, %arg1: i32) -> (i32, i32) {
    %c0_i32 = arith.constant 0 : i32
    %c0_i32_0 = arith.constant 0 : i32
    return %c0_i32, %arg0 : i32, i32
  }
  func.func @transform_3(%arg0: i32, %arg1: i32) -> (i32, i32) {
    %c0_i32 = arith.constant 0 : i32
    return %arg1, %arg0 : i32, i32
  }
}

</mosaic_0001>

<bundles_post_ra>
// kernel: fc1l_forward.1
= control target key start
LH: loop header
LB: loop body
LE: loop exit
PB: predicated region body
PF: predicated region fallthrough
CT: control target
= control target key end

     0   :  { %8 = vsyncpa [#allocation3], 0  ;;  %s211_s12 = smov [#allocation2]   ;;  %s262_s0 = inlined_call_operand.vmem [shape: s32[8,4], index: 0, kind: input, shape index: {}]   ;;  %s263_s1 = inlined_call_operand.hbm [shape: f32[32,60], index: 1, kind: input, shape index: {}]   ;;  %s264_s2 = inlined_call_operand.vmem [shape: f32[1,60], index: 2, kind: input, shape index: {}]   ;;  %s265_s3 = inlined_call_operand.vmem [shape: f32[8,60], index: 3, kind: output, shape index: {}]  }
   0x1   :  { %s16_s13 = sshll.u32 %s211_s12, 4  ;;  %s187_s16 = scalar_lea.hbm %s263_s1, 512  ;;  %s17_s13 = int_to_ptr.vmem [resolvable:$true] %s16_s13 }
   0x2   :  { %p188_p0 = scmp.ne.s32.totalorder %s263_s1, %s187_s16  ;;  %p191_p1 = scmp.lt.u32.totalorder %s187_s16, %s263_s1 }
   0x4   :  { %p193_p2 = pnand %p191_p1, %p188_p0 }
   0x6   :  { %196 = shalt.err (!%p193_p2)
}
   0x7   :  { %s197_s21 = scalar_lea.vmem %s17_s13, 512  ;;  %p202_p4 = scmp.lt.s32.totalorder %s17_s13, %s17_s13 }
   0x8   :  { %p198_p3 = scmp.ne.s32.totalorder %s17_s13, %s197_s21  ;;  %p203_p5 = scmp.lt.s32.totalorder %s197_s21, %s197_s21 }
   0xa   :  { %p204_p6 = por %p203_p5, %p202_p4 }
   0xc   :  { %p205_p7 = pnand %p204_p6, %p198_p3 }
   0xe   :  { %208 = shalt.err (!%p205_p7)
}
   0xf   :  { %s212_s22 = smov 128   ;;  %s213_s23 = smov 8  }
  0x10   :  { %22 = dma.hbm_to_vmem [thread:$0]  %s263_s1, 512, %s17_s13, [#allocation3], %s212_s22, %s212_s22, %s213_s23  }
  0x11   :  { %209 = dma.done.wait [#allocation3], 512  }
  0x12   :  { %210 = vsyncadd [#allocation3], 4294966784  ;;  %v214_v0 = vmov 0   ;;  %v215_v1 = vmov 2   ;;  %v28_v2 = vld [vmem:[%s262_s0] sm:$0xff]  ;;  %v56_v5 = vld [vmem:[#allocation2 + $0x8] sm:$0xff]  ;;  %v29_v16 = vlaneseq }
  0x13   :  { %182 = vset.pattern.permute.xlu0 %v214_v0  ;;  %184 = vset.pattern.permute.xlu1 %v215_v1  ;;  %v41_v3 = vadd.s32 16, %v28_v2  ;;  %v55_v4 = vld [vmem:[#allocation2] sm:$0xff]  ;;  %v35_v6 = vadd.s32 8, %v28_v2  ;;  %v216_v8 = vmov 0.0|0.0   ;;  %v47_v9 = vadd.s32 24, %v28_v2  ;;  %v57_v11 = vld [vmem:[#allocation2 + $0x10] sm:$0xff] }
  0x14   :  { %32 = vperm.xlu0 %182, %v28_v2   ;;  %v167_v7 = vpack.c.bf16 %v56_v5, %v55_v4  ;;  %166 = vmatprep.subr.bf16.mxu0 %v216_v8  ;;  %v217_v10 = vmov 1   ;;  %v58_v12 = vld [vmem:[#allocation2 + $0x18] sm:$0xff]  ;;  %v218_v14 = vmov 3   ;;  %vm219_vm0 = vmmov 0   ;;  %v148_v23 = vld [vmem:[%s264_s2] ss:$0 sm:$0xff] }
  0x15   :  { %43 = vperm.xlu1 %184, %v41_v3   ;;  %v170_v13 = vpack.c.bf16 %v58_v12, %v57_v11  ;;  %v220_v15 = vmov 0.0   ;;  %v30_v18 = vand.u32 127, %v29_v16  ;;  %vm66_vm7 = vcmask 261120  }
  0x16   :  { %168 = vmatpush3.bf16.msra.mxu0 %v167_v7  ;;  %163 = vmatprep.mubr.msk.f32.mxu0 %vm219_vm0, %v220_v15  ;;  %vm140_vm9 = vcmask 490496  }
  0x17   :  { %169 = vmatprep.subr.bf16.mxu0 %v216_v8 }
  0x18   :  { %183 = vset.pattern.permute.xlu0 %v217_v10 }
  0x19   :  { %37 = vperm.xlu0 %183, %v35_v6   ;;  %185 = vset.pattern.permute.xlu1 %v218_v14 }
  0x1a   :  { %49 = vperm.xlu1 %185, %v47_v9   ;;  %171 = vmatpush3.bf16.msra.mxu0 %v170_v13 }
  0x1d   :  { %186 = vset.pattern.permute.xlu0 %v218_v14 }
  0x93   :  { %v33_v17 = vpop.permute.xlu0 %32 }
  0x94   :  { %v44_v19 = vpop.permute.xlu1 %43  ;;  %vm34_vm1 = vcmp.eq.s32.totalorder %v30_v18, %v33_v17 }
  0x95   :  { %vm45_vm3 = vcmp.eq.s32.totalorder %v30_v18, %v44_v19 }
  0x98   :  { %v38_v20 = vpop.permute.xlu0 %37 }
  0x99   :  { %vm39_vm2 = vcmp.eq.s32.totalorder %v30_v18, %v38_v20  ;;  %v50_v21 = vpop.permute.xlu1 %49 }
  0x9a   :  { %vm40_vm4 = vmor %vm34_vm1, %vm39_vm2  ;;  %vm51_vm6 = vcmp.eq.s32.totalorder %v30_v18, %v50_v21 }
  0x9b   :  { %vm46_vm5 = vmor %vm40_vm4, %vm45_vm3 }
  0x9c   :  { %vm52_vm8 = vmor %vm46_vm5, %vm51_vm6 }
  0x9d   :  { %v147_v22 = vsel %vm52_vm8, 1.0, %v220_v15 }
  0x9e   :  { %164 = vmatmul.mubr.msk.f32.vlgmr.msra.gmra.mrb[0].mxu0 %vm66_vm7, %v147_v22 }
 0x171   :  { %v136_v24 = vpop.f32.mrb[0].mxu0 }
 0x172   :  { %v137_v25 = vadd.f32 %v148_v23, %v136_v24  ;;  %v165_v26 = vpop.f32.mrb[1].mxu0 }
 0x174   :  { %141 = vst.msk [vmem:[%s265_s3] sm:$0xff] %vm140_vm9, %v137_v25 }
 0x175   :  { %146 = vsyncpa [#allocation3], 1 }

</bundles_post_ra>
